<compile_context>
chip_gen: v5e
topology: v5e:2x2
jax: 0.10.0
libtpu: 0.0.40
codegen_flags: <defaults>
</compile_context>

<pallas_src>
import functools

import jax
import jax.numpy as jnp
from jax.experimental import pallas as pl
from jax.experimental.pallas import tpu as pltpu

LANES = 128
SUBLANES = 8
_TARGET_BLOCK_BYTES = 512 * 1024  # ~0.5 MiB per input block (measured sweet spot)


def _round_up(x, m):
    return ((x + m - 1) // m) * m


def _weighted_losses_kernel(x_ref, t_ref, out_sq_ref, out_abs_ref,
                            acc_sq_ref, acc_abs_ref, *,
                            rows, block_rows, blocks_per_shard, needs_mask):
    """Accumulates per-shard sum((x-t)^2) and sum(|x-t|) into (8,128) partials.

    x_ref, t_ref         : (block_rows, 128) tiles in the input dtype
    out_sq/out_abs_ref   : (8, 128) f32 per-shard partial-sum outputs (VMEM)
    acc_sq/acc_abs_ref   : (8, 128) f32 VMEM vector accumulators
    grid                 : (shard [parallel], row-block in shard [arbitrary])
    """
    i = pl.program_id(0)  # shard index
    j = pl.program_id(1)  # row-block within this shard

    @pl.when(j == 0)
    def _init():
        acc_sq_ref[...] = jnp.zeros_like(acc_sq_ref)
        acc_abs_ref[...] = jnp.zeros_like(acc_abs_ref)

    nsub = block_rows // SUBLANES
    # Cast in-kernel (free in this mem-bound regime), then view the block as
    # (nsub, 8, 128) so the per-step reduction is a leading-axis vector add
    # on the VPU, not a cross-lane XLU reduce.
    x = x_ref[...].astype(jnp.float32).reshape(nsub, SUBLANES, LANES)
    t = t_ref[...].astype(jnp.float32).reshape(nsub, SUBLANES, LANES)
    d = x - t

    if needs_mask:
        # Row-level validity mask: handles blocks that overhang the array and
        # clamped duplicate blocks on the last shard.
        row0 = (i * blocks_per_shard + j) * block_rows
        sub_id = jax.lax.broadcasted_iota(jnp.int32, (nsub, SUBLANES, LANES), 0)
        sublane_id = jax.lax.broadcasted_iota(jnp.int32, (nsub, SUBLANES, LANES), 1)
        row_ids = row0 + sub_id * SUBLANES + sublane_id
        d = jnp.where(row_ids < rows, d, 0.0)

    acc_sq_ref[...] += jnp.sum(d * d, axis=0)
    acc_abs_ref[...] += jnp.sum(jnp.abs(d), axis=0)

    @pl.when(j == pl.num_programs(1) - 1)
    def _finalize():
        out_sq_ref[...] = acc_sq_ref[...]
        out_abs_ref[...] = acc_abs_ref[...]


def weighted_losses(inputs, targets, weights=(0.5, 0.5)):
    """Pallas implementation of WeightedLosses([MSELoss(), L1Loss()], weights)."""
    assert inputs.shape == targets.shape
    n_valid = int(inputs.size)
    w_mse, w_l1 = float(weights[0]), float(weights[1])

    # Keep the original dtype in HBM (bf16 stays bf16 -> half the HBM bytes);
    # the kernel casts each tile to f32 internally.
    x = inputs.reshape(-1)
    t = targets.reshape(-1)

    # Lane-dense (rows, 128) view. Reshape is free; a zero-pad copy happens
    # only when numel % 128 != 0 (a zero difference contributes 0 to both the
    # MSE and L1 sums, so padding both operands with zeros is exact).
    pad = (-n_valid) % LANES
    if pad:
        x = jnp.pad(x, (0, pad))
        t = jnp.pad(t, (0, pad))
    rows = x.size // LANES
    x2 = x.reshape(rows, LANES)
    t2 = t.reshape(rows, LANES)

    # ~0.5 MiB per input block, never larger than the (8-row padded) input.
    itemsize = jnp.dtype(x2.dtype).itemsize
    block_rows = _TARGET_BLOCK_BYTES // (LANES * itemsize)
    block_rows = max(SUBLANES, min(block_rows, _round_up(rows, SUBLANES)))
    block_rows = _round_up(block_rows, SUBLANES)

    nb = -(-rows // block_rows)                 # total row-blocks
    num_shards = 2 if nb >= 2 else 1            # 2 TCs on v7x; no-op on v5e/v6e
    blocks_per_shard = -(-nb // num_shards)
    needs_clamp = num_shards * blocks_per_shard > nb
    needs_mask = needs_clamp or (nb * block_rows > rows)

    def in_index_map(i, j):
        gb = i * blocks_per_shard + j
        if needs_clamp:
            gb = jnp.minimum(gb, nb - 1)        # duplicate block; fully masked
        return (gb, 0)

    kernel = functools.partial(
        _weighted_losses_kernel,
        rows=rows,
        block_rows=block_rows,
        blocks_per_shard=blocks_per_shard,
        needs_mask=needs_mask,
    )

    out_sq, out_abs = pl.pallas_call(
        kernel,
        out_shape=(
            jax.ShapeDtypeStruct((num_shards * SUBLANES, LANES), jnp.float32),
            jax.ShapeDtypeStruct((num_shards * SUBLANES, LANES), jnp.float32),
        ),
        grid_spec=pltpu.PrefetchScalarGridSpec(
            num_scalar_prefetch=0,
            grid=(num_shards, blocks_per_shard),
            in_specs=[
                pl.BlockSpec((block_rows, LANES), in_index_map),
                pl.BlockSpec((block_rows, LANES), in_index_map),
            ],
            out_specs=(
                pl.BlockSpec((SUBLANES, LANES), lambda i, j: (i, 0)),
                pl.BlockSpec((SUBLANES, LANES), lambda i, j: (i, 0)),
            ),
            scratch_shapes=[
                pltpu.VMEM((SUBLANES, LANES), jnp.float32),
                pltpu.VMEM((SUBLANES, LANES), jnp.float32),
            ],
        ),
        compiler_params=pltpu.CompilerParams(
            dimension_semantics=("parallel", "arbitrary"),
        ),
    )(x2, t2)

    # Final tiny cross-lane reduce + mean + weighting (2 x shards x 8 x 128).
    inv_n = 1.0 / float(n_valid)
    mse = jnp.sum(out_sq) * inv_n
    l1 = jnp.sum(out_abs) * inv_n
    return jnp.float32(w_mse) * mse + jnp.float32(w_l1) * l1


def _reference(x, t, weights=(0.5, 0.5)):
    d = x.astype(jnp.float32) - t.astype(jnp.float32)
    return weights[0] * jnp.mean(d * d) + weights[1] * jnp.mean(jnp.abs(d))


if __name__ == "__main__":
    key = jax.random.PRNGKey(0)

    # 1) Small NCHW-style inputs consistent with a pixel-wise loss module.
    k1, k2 = jax.random.split(key)
    x = jax.random.normal(k1, (2, 4, 16, 16), dtype=jnp.float32)
    t = jax.random.normal(k2, (2, 4, 16, 16), dtype=jnp.float32)
    total = jax.block_until_ready(weighted_losses(x, t))
    ref = _reference(x, t)
    assert jnp.allclose(total, ref, rtol=1e-5, atol=1e-6), (total, ref)

    # 2) A shape that exercises multiple row-blocks, both shards, index-map
    #    clamping and in-kernel masking (rows = 2200, block_rows = 1024).
    k3, k4 = jax.random.split(k1)
    xb = jax.random.normal(k3, (2, 4, 160, 220), dtype=jnp.float32)
    tb = jax.random.normal(k4, (2, 4, 160, 220), dtype=jnp.float32)
    total_b = jax.block_until_ready(weighted_losses(xb, tb))
    ref_b = _reference(xb, tb)
    assert jnp.allclose(total_b, ref_b, rtol=1e-4, atol=1e-5), (total_b, ref_b)

    print("KERNEL_OK")
</pallas_src>

<mosaic_0001>
module attributes {stable_mosaic.version = 11 : i64} {
  func.func @_weighted_losses_kernel(%arg0: i32, %arg1: i32, %arg2: memref<16x128xf32, #tpu.memory_space<vmem>>, %arg3: memref<16x128xf32, #tpu.memory_space<vmem>>, %arg4: memref<8x128xf32, #tpu.memory_space<vmem>>, %arg5: memref<8x128xf32, #tpu.memory_space<vmem>>, %arg6: memref<8x128xf32, #tpu.memory_space<vmem>>, %arg7: memref<8x128xf32, #tpu.memory_space<vmem>>) attributes {dimension_semantics = [#tpu.dimension_semantics<parallel>, #tpu.dimension_semantics<arbitrary>], iteration_bounds = array<i64: 1, 1>, scalar_prefetch = 0 : i64, scratch_operands = 2 : i64, tpu.core_type = #tpu.core_type<tc>, window_params = [{transform_indices = @transform_0, window_bounds = array<i64: 16, 128>}, {transform_indices = @transform_1, window_bounds = array<i64: 16, 128>}, {transform_indices = @transform_2, window_bounds = array<i64: 8, 128>}, {transform_indices = @transform_3, window_bounds = array<i64: 8, 128>}]} {
    %c0_i32 = arith.constant 0 : i32
    %0 = arith.cmpi eq, %arg1, %c0_i32 : i32
    %1 = arith.extui %0 : i1 to i32
    %c0_i32_0 = arith.constant 0 : i32
    %2 = arith.cmpi ne, %1, %c0_i32_0 : i32
    scf.if %2 {
      %cst_15 = arith.constant 0.000000e+00 : f32
      %21 = vector.broadcast %cst_15 : f32 to vector<8x128xf32>
      %c0_16 = arith.constant 0 : index
      %c0_17 = arith.constant 0 : index
      %22 = vector.load %arg6[%c0_16, %c0_17] : memref<8x128xf32, #tpu.memory_space<vmem>>, vector<8x128xf32>
      tpu.vector_store %arg6[%c0_16, %c0_17], %21 {strides = array<i32>} : memref<8x128xf32, #tpu.memory_space<vmem>>, vector<8x128xf32>,
      %cst_18 = arith.constant 0.000000e+00 : f32
      %23 = vector.broadcast %cst_18 : f32 to vector<8x128xf32>
      %c0_19 = arith.constant 0 : index
      %c0_20 = arith.constant 0 : index
      %24 = vector.load %arg7[%c0_19, %c0_20] : memref<8x128xf32, #tpu.memory_space<vmem>>, vector<8x128xf32>
      tpu.vector_store %arg7[%c0_19, %c0_20], %23 {strides = array<i32>} : memref<8x128xf32, #tpu.memory_space<vmem>>, vector<8x128xf32>,
    } else {
    }
    %c0 = arith.constant 0 : index
    %c0_1 = arith.constant 0 : index
    %3 = vector.load %arg2[%c0, %c0_1] : memref<16x128xf32, #tpu.memory_space<vmem>>, vector<16x128xf32>
    %4 = vector.shape_cast %3 : vector<16x128xf32> to vector<2x8x128xf32>
    %c0_2 = arith.constant 0 : index
    %c0_3 = arith.constant 0 : index
    %5 = vector.load %arg3[%c0_2, %c0_3] : memref<16x128xf32, #tpu.memory_space<vmem>>, vector<16x128xf32>
    %6 = vector.shape_cast %5 : vector<16x128xf32> to vector<2x8x128xf32>
    %7 = arith.subf %4, %6 : vector<2x8x128xf32>
    %c0_4 = arith.constant 0 : index
    %c0_5 = arith.constant 0 : index
    %8 = vector.load %arg6[%c0_4, %c0_5] : memref<8x128xf32, #tpu.memory_space<vmem>>, vector<8x128xf32>
    %9 = arith.mulf %7, %7 : vector<2x8x128xf32>
    %cst = arith.constant dense<0.000000e+00> : vector<8x128xf32>
    %10 = vector.multi_reduction <add>, %9, %cst [0] : vector<2x8x128xf32> to vector<8x128xf32>
    %11 = arith.addf %8, %10 : vector<8x128xf32>
    %c0_6 = arith.constant 0 : index
    %c0_7 = arith.constant 0 : index
    %12 = vector.load %arg6[%c0_6, %c0_7] : memref<8x128xf32, #tpu.memory_space<vmem>>, vector<8x128xf32>
    tpu.vector_store %arg6[%c0_6, %c0_7], %11 {strides = array<i32>} : memref<8x128xf32, #tpu.memory_space<vmem>>, vector<8x128xf32>,
    %c0_8 = arith.constant 0 : index
    %c0_9 = arith.constant 0 : index
    %13 = vector.load %arg7[%c0_8, %c0_9] : memref<8x128xf32, #tpu.memory_space<vmem>>, vector<8x128xf32>
    %14 = math.absf %7 : vector<2x8x128xf32>
    %cst_10 = arith.constant dense<0.000000e+00> : vector<8x128xf32>
    %15 = vector.multi_reduction <add>, %14, %cst_10 [0] : vector<2x8x128xf32> to vector<8x128xf32>
    %16 = arith.addf %13, %15 : vector<8x128xf32>
    %c0_11 = arith.constant 0 : index
    %c0_12 = arith.constant 0 : index
    %17 = vector.load %arg7[%c0_11, %c0_12] : memref<8x128xf32, #tpu.memory_space<vmem>>, vector<8x128xf32>
    tpu.vector_store %arg7[%c0_11, %c0_12], %16 {strides = array<i32>} : memref<8x128xf32, #tpu.memory_space<vmem>>, vector<8x128xf32>,
    %c0_i32_13 = arith.constant 0 : i32
    %18 = arith.cmpi eq, %arg1, %c0_i32_13 : i32
    %19 = arith.extui %18 : i1 to i32
    %c0_i32_14 = arith.constant 0 : i32
    %20 = arith.cmpi ne, %19, %c0_i32_14 : i32
    scf.if %20 {
      %c0_15 = arith.constant 0 : index
      %c0_16 = arith.constant 0 : index
      %21 = vector.load %arg6[%c0_15, %c0_16] : memref<8x128xf32, #tpu.memory_space<vmem>>, vector<8x128xf32>
      %c0_17 = arith.constant 0 : index
      %c0_18 = arith.constant 0 : index
      %22 = vector.load %arg4[%c0_17, %c0_18] : memref<8x128xf32, #tpu.memory_space<vmem>>, vector<8x128xf32>
      tpu.vector_store %arg4[%c0_17, %c0_18], %21 {strides = array<i32>} : memref<8x128xf32, #tpu.memory_space<vmem>>, vector<8x128xf32>,
      %c0_19 = arith.constant 0 : index
      %c0_20 = arith.constant 0 : index
      %23 = vector.load %arg7[%c0_19, %c0_20] : memref<8x128xf32, #tpu.memory_space<vmem>>, vector<8x128xf32>
      %c0_21 = arith.constant 0 : index
      %c0_22 = arith.constant 0 : index
      %24 = vector.load %arg5[%c0_21, %c0_22] : memref<8x128xf32, #tpu.memory_space<vmem>>, vector<8x128xf32>
      tpu.vector_store %arg5[%c0_21, %c0_22], %23 {strides = array<i32>} : memref<8x128xf32, #tpu.memory_space<vmem>>, vector<8x128xf32>,
    } else {
    }
    return
  }
  func.func @transform_0(%arg0: i32, %arg1: i32) -> (i32, i32) {
    %c1_i32 = arith.constant 1 : i32
    %0 = arith.muli %arg0, %c1_i32 : i32
    %1 = arith.addi %0, %arg1 : i32
    %c0_i32 = arith.constant 0 : i32
    %c0_i32_0 = arith.constant 0 : i32
    return %1, %c0_i32 : i32, i32
  }
  func.func @transform_1(%arg0: i32, %arg1: i32) -> (i32, i32) {
    %c1_i32 = arith.constant 1 : i32
    %0 = arith.muli %arg0, %c1_i32 : i32
    %1 = arith.addi %0, %arg1 : i32
    %c0_i32 = arith.constant 0 : i32
    %c0_i32_0 = arith.constant 0 : i32
    return %1, %c0_i32 : i32, i32
  }
  func.func @transform_2(%arg0: i32, %arg1: i32) -> (i32, i32) {
    %c0_i32 = arith.constant 0 : i32
    %c0_i32_0 = arith.constant 0 : i32
    return %arg0, %c0_i32 : i32, i32
  }
  func.func @transform_3(%arg0: i32, %arg1: i32) -> (i32, i32) {
    %c0_i32 = arith.constant 0 : i32
    %c0_i32_0 = arith.constant 0 : i32
    return %arg0, %c0_i32 : i32, i32
  }
}

</mosaic_0001>

<bundles_post_ra>
// kernel: tpu_custom_call.1
= control target key start
LH: loop header
LB: loop body
LE: loop exit
PB: predicated region body
PF: predicated region fallthrough
CT: control target
= control target key end

     0   :  { %9 = vsyncpa [#allocation5], 0  ;;  %s272_s0 = inlined_call_operand.hbm [shape: f32[16,128], index: 0, kind: input, shape index: {}]   ;;  %s273_s1 = inlined_call_operand.hbm [shape: f32[16,128], index: 1, kind: input, shape index: {}]   ;;  %s274_s2 = inlined_call_operand.hbm [shape: f32[8,128], index: 2, kind: output, shape index: {0}]   ;;  %s275_s3 = inlined_call_operand.hbm [shape: f32[8,128], index: 3, kind: output, shape index: {1}]  }
   0x1   :  { %10 = vsyncpa [#allocation8], 0 }
   0x2   :  { %11 = vsyncpa [#allocation6], 0 }
   0x3   :  { %12 = vsyncpa [#allocation11], 0  ;;  %s21_s14 = sshll.u32 %s272_s0, 4  ;;  %s234_s15 = smov [#allocation4]   ;;  %s22_s14 = int_to_ptr.hbm [resolvable:$true] %s21_s14 }
   0x4   :  { %s23_s16 = sshll.u32 %s234_s15, 4  ;;  %s38_s19 = sshll.u32 %s273_s1, 4  ;;  %s24_s16 = int_to_ptr.vmem [resolvable:$true] %s23_s16  ;;  %s39_s19 = int_to_ptr.hbm [resolvable:$true] %s38_s19 }
   0x5   :  { %s235_s20 = smov 128   ;;  %s236_s21 = smov 8  }
   0x6   :  { %29 = dma.hbm_to_vmem [thread:$0]  %s22_s14, 256, %s24_s16, [#allocation5], %s235_s20, %s235_s20, %s236_s21  }
   0x7   :  { %s237_s22 = smov [#allocation7]  }
   0x8   :  { %s40_s23 = sshll.u32 %s237_s22, 4  ;;  %s41_s23 = int_to_ptr.vmem [resolvable:$true] %s40_s23 }
   0x9   :  { %46 = dma.hbm_to_vmem [thread:$0]  %s39_s19, 256, %s41_s23, [#allocation8], %s235_s20, %s235_s20, %s236_s21  }
   0xa   :  { %226 = dma.done.wait [#allocation5], 256  }
   0xb   :  { %227 = vsyncadd [#allocation5], 4294967040 }
   0xc   :  { %228 = dma.done.wait [#allocation8], 256  }
   0xd   :  { %229 = vsyncadd [#allocation8], 4294967040  ;;  %v65_v0 = vld [vmem:[#allocation4] sm:$0xff]  ;;  %v66_v1 = vld [vmem:[#allocation4 + $0x8] sm:$0xff]  ;;  %s238_s0 = smov [#allocation9]   ;;  %s97_s26 = sshll.u32 %s274_s2, 4  ;;  %s98_s26 = int_to_ptr.hbm [resolvable:$true] %s97_s26 }
   0xe   :  { %v67_v2 = vld [vmem:[#allocation7] sm:$0xff]  ;;  %v68_v3 = vld [vmem:[#allocation7 + $0x8] sm:$0xff]  ;;  %s95_s1 = sshll.u32 %s238_s0, 4  ;;  %s239_s27 = smov [#allocation10]   ;;  %s96_s1 = int_to_ptr.vmem [resolvable:$true] %s95_s1 }
   0xf   :  { %v69_v4 = vsub.f32 %v65_v0, %v67_v2  ;;  %v70_v5 = vsub.f32 %v66_v1, %v68_v3  ;;  %s106_s28 = sshll.u32 %s239_s27, 4  ;;  %s108_s4 = sshll.u32 %s275_s3, 4  ;;  %s107_s28 = int_to_ptr.vmem [resolvable:$true] %s106_s28  ;;  %s109_s4 = int_to_ptr.hbm [resolvable:$true] %s108_s4 }
  0x11   :  { %v72_v6 = vmul.f32 %v69_v4, %v69_v4  ;;  %v78_v7 = vand.u32 2147483647, %v69_v4  ;;  %v73_v8 = vmul.f32 %v70_v5, %v70_v5  ;;  %v79_v9 = vand.u32 2147483647, %v70_v5 }
  0x13   :  { %v74_v10 = vadd.f32 %v73_v8, %v72_v6  ;;  %v80_v11 = vadd.f32 %v79_v9, %v78_v7 }
  0x15   :  { %87 = vst [vmem:[#allocation9] sm:$0xff] %v74_v10 }
  0x16   :  { %89 = vst [vmem:[#allocation10] sm:$0xff] %v80_v11  ;;  %100 = dma.vmem_to_hbm [thread:$0]  %s96_s1, 128, %s98_s26, [#allocation6]  }
  0x17   :  { %111 = dma.vmem_to_hbm [thread:$0]  %s107_s28, 128, %s109_s4, [#allocation11]  }
  0x18   :  { %230 = dma.done.wait [#allocation6], 128  }
  0x19   :  { %231 = vsyncadd [#allocation6], 4294967168 }
  0x1a   :  { %232 = dma.done.wait [#allocation11], 128  }
  0x1b   :  { %233 = vsyncadd [#allocation11], 4294967168 }
  0x1c   :  { %120 = vsyncpa [#allocation5], 1 }
  0x1d   :  { %121 = vsyncpa [#allocation8], 1 }
  0x1e   :  { %122 = vsyncpa [#allocation6], 1 }
  0x1f   :  { %123 = vsyncpa [#allocation11], 1 }

</bundles_post_ra>
